<compile_context>
chip_gen: v5e
topology: v5e:2x2
jax: 0.10.0
libtpu: 0.0.40
codegen_flags: <defaults>
</compile_context>

<pallas_src>
import jax
import jax.numpy as jnp
from jax.experimental import pallas as pl
from jax.experimental.pallas import tpu as pltpu


def _round_up(x, m):
    return ((x + m - 1) // m) * m


def mf_bias_kernel(ut_ref, vt_ref, bu_ref, bv_ref, out_ref):
    # ut_ref, vt_ref : (E, TB)  gathered user / item embeddings, batch on lanes
    # bu_ref, bv_ref : (1, TB)  gathered user / item biases
    # out_ref        : (1, TB)  per-example score
    prod = ut_ref[...].astype(jnp.float32) * vt_ref[...].astype(jnp.float32)
    dot = jnp.sum(prod, axis=0, keepdims=True)            # sublane reduce -> (1, TB)
    out_ref[...] = (
        dot + bu_ref[...].astype(jnp.float32) + bv_ref[...].astype(jnp.float32)
    ).astype(out_ref.dtype)


def mf_bias_forward(u, v, user_emb, item_emb, user_bias, item_bias, *, tb=512):
    """Equivalent of MF_bias.forward: (U * V).sum(1) + b_u + b_v -> shape (B,)."""
    B = u.shape[0]
    E = user_emb.shape[1]

    # Lane-dense tile: multiple of 128, no larger than the (padded) batch.
    tb = _round_up(min(tb, _round_up(B, 128)), 128)
    B_pad = _round_up(B, tb)
    pad = B_pad - B

    # Pad indices with 0 (a valid row); padded outputs are discarded below.
    u_p = jnp.pad(u, (0, pad))
    v_p = jnp.pad(v, (0, pad))

    # Glue: nn.Embedding lookup == row gather, emitted transposed (E, B_pad)
    # so the kernel sees fully lane-dense vregs (batch on the 128-lane axis).
    U_T = jnp.take(user_emb, u_p, axis=0).T              # (E, B_pad)
    V_T = jnp.take(item_emb, v_p, axis=0).T              # (E, B_pad)
    b_u = jnp.take(user_bias[:, 0], u_p, axis=0)[None, :]  # (1, B_pad)
    b_v = jnp.take(item_bias[:, 0], v_p, axis=0)[None, :]  # (1, B_pad)

    grid = (B_pad // tb,)
    out = pl.pallas_call(
        mf_bias_kernel,
        out_shape=jax.ShapeDtypeStruct((1, B_pad), jnp.float32),
        grid_spec=pltpu.PrefetchScalarGridSpec(
            num_scalar_prefetch=0,
            grid=grid,
            in_specs=[
                pl.BlockSpec((E, tb), lambda i: (0, i)),   # U^T tile
                pl.BlockSpec((E, tb), lambda i: (0, i)),   # V^T tile
                pl.BlockSpec((1, tb), lambda i: (0, i)),   # b_u tile
                pl.BlockSpec((1, tb), lambda i: (0, i)),   # b_v tile
            ],
            out_specs=pl.BlockSpec((1, tb), lambda i: (0, i)),
        ),
        compiler_params=pltpu.CompilerParams(
            dimension_semantics=("parallel",)),
    )(U_T, V_T, b_u, b_v)

    # Drop padded lanes; matches the PyTorch (B,) result (squeeze of (B, 1)).
    return out[0, :B]


if __name__ == "__main__":
    # Small, deterministic synthetic setup.
    num_users, num_items, emb_size = 64, 48, 32
    batch = 300  # not a multiple of the tile -> exercises padding + multi-tile

    key = jax.random.PRNGKey(0)
    k_ue, k_ie, k_ub, k_ib, k_u, k_v = jax.random.split(key, 6)

    # Deterministic parameter init mirroring the PyTorch __init__:
    #   user_emb, item_emb ~ U(0, 0.05); user_bias, item_bias ~ U(-0.01, 0.01)
    user_emb = jax.random.uniform(k_ue, (num_users, emb_size), jnp.float32, 0.0, 0.05)
    item_emb = jax.random.uniform(k_ie, (num_items, emb_size), jnp.float32, 0.0, 0.05)
    user_bias = jax.random.uniform(k_ub, (num_users, 1), jnp.float32, -0.01, 0.01)
    item_bias = jax.random.uniform(k_ib, (num_items, 1), jnp.float32, -0.01, 0.01)

    # Example index inputs u, v (like LongTensors of user / item ids).
    u = jax.random.randint(k_u, (batch,), 0, num_users, dtype=jnp.int32)
    v = jax.random.randint(k_v, (batch,), 0, num_items, dtype=jnp.int32)

    out = mf_bias_forward(u, v, user_emb, item_emb, user_bias, item_bias, tb=128)
    out = jax.block_until_ready(out)

    # Pure-JAX reference for correctness.
    U = user_emb[u]
    V = item_emb[v]
    ref = (U * V).sum(axis=1) + user_bias[u, 0] + item_bias[v, 0]

    assert out.shape == (batch,), out.shape
    assert jnp.allclose(out, ref, atol=1e-5, rtol=1e-5), (out, ref)
    print("KERNEL_OK")
</pallas_src>

<mosaic_0001>
module attributes {stable_mosaic.version = 11 : i64} {
  func.func @mf_bias_kernel(%arg0: i32, %arg1: memref<32x128xf32, #tpu.memory_space<vmem>>, %arg2: memref<32x128xf32, #tpu.memory_space<vmem>>, %arg3: memref<1x128xf32, #tpu.memory_space<vmem>>, %arg4: memref<1x128xf32, #tpu.memory_space<vmem>>, %arg5: memref<1x128xf32, #tpu.memory_space<vmem>>) attributes {dimension_semantics = [#tpu.dimension_semantics<parallel>], iteration_bounds = array<i64: 3>, scalar_prefetch = 0 : i64, scratch_operands = 0 : i64, tpu.core_type = #tpu.core_type<tc>, window_params = [{transform_indices = @transform_0, window_bounds = array<i64: 32, 128>}, {transform_indices = @transform_1, window_bounds = array<i64: 32, 128>}, {transform_indices = @transform_2, window_bounds = array<i64: 1, 128>}, {transform_indices = @transform_3, window_bounds = array<i64: 1, 128>}, {transform_indices = @transform_4, window_bounds = array<i64: 1, 128>}]} {
    %c0 = arith.constant 0 : index
    %c0_0 = arith.constant 0 : index
    %0 = vector.load %arg1[%c0, %c0_0] : memref<32x128xf32, #tpu.memory_space<vmem>>, vector<32x128xf32>
    %c0_1 = arith.constant 0 : index
    %c0_2 = arith.constant 0 : index
    %1 = vector.load %arg2[%c0_1, %c0_2] : memref<32x128xf32, #tpu.memory_space<vmem>>, vector<32x128xf32>
    %2 = arith.mulf %0, %1 : vector<32x128xf32>
    %cst = arith.constant dense<0.000000e+00> : vector<128xf32>
    %3 = vector.multi_reduction <add>, %2, %cst [0] : vector<32x128xf32> to vector<128xf32>
    %4 = vector.shape_cast %3 : vector<128xf32> to vector<1x128xf32>
    %c0_3 = arith.constant 0 : index
    %c0_4 = arith.constant 0 : index
    %5 = vector.load %arg3[%c0_3, %c0_4] : memref<1x128xf32, #tpu.memory_space<vmem>>, vector<1x128xf32>
    %6 = arith.addf %4, %5 : vector<1x128xf32>
    %c0_5 = arith.constant 0 : index
    %c0_6 = arith.constant 0 : index
    %7 = vector.load %arg4[%c0_5, %c0_6] : memref<1x128xf32, #tpu.memory_space<vmem>>, vector<1x128xf32>
    %8 = arith.addf %6, %7 : vector<1x128xf32>
    %c0_7 = arith.constant 0 : index
    %c0_8 = arith.constant 0 : index
    %9 = vector.load %arg5[%c0_7, %c0_8] : memref<1x128xf32, #tpu.memory_space<vmem>>, vector<1x128xf32>
    tpu.vector_store %arg5[%c0_7, %c0_8], %8 {strides = array<i32>} : memref<1x128xf32, #tpu.memory_space<vmem>>, vector<1x128xf32>,
    return
  }
  func.func @transform_0(%arg0: i32) -> (i32, i32) {
    %c0_i32 = arith.constant 0 : i32
    %c0_i32_0 = arith.constant 0 : i32
    return %c0_i32, %arg0 : i32, i32
  }
  func.func @transform_1(%arg0: i32) -> (i32, i32) {
    %c0_i32 = arith.constant 0 : i32
    %c0_i32_0 = arith.constant 0 : i32
    return %c0_i32, %arg0 : i32, i32
  }
  func.func @transform_2(%arg0: i32) -> (i32, i32) {
    %c0_i32 = arith.constant 0 : i32
    %c0_i32_0 = arith.constant 0 : i32
    return %c0_i32, %arg0 : i32, i32
  }
  func.func @transform_3(%arg0: i32) -> (i32, i32) {
    %c0_i32 = arith.constant 0 : i32
    %c0_i32_0 = arith.constant 0 : i32
    return %c0_i32, %arg0 : i32, i32
  }
  func.func @transform_4(%arg0: i32) -> (i32, i32) {
    %c0_i32 = arith.constant 0 : i32
    %c0_i32_0 = arith.constant 0 : i32
    return %c0_i32, %arg0 : i32, i32
  }
}

</mosaic_0001>

<bundles_post_ra>
// kernel: tpu_custom_call.1
= control target key start
LH: loop header
LB: loop body
LE: loop exit
PB: predicated region body
PF: predicated region fallthrough
CT: control target
= control target key end

     0   :  { %s992_s0 = inlined_call_operand.hbm [shape: f32[32,384], index: 0, kind: input, shape index: {}]   ;;  %s993_s1 = inlined_call_operand.hbm [shape: f32[32,384], index: 1, kind: input, shape index: {}]   ;;  %s994_s2 = inlined_call_operand.hbm [shape: f32[1,384], index: 2, kind: input, shape index: {}]   ;;  %s995_s3 = inlined_call_operand.hbm [shape: f32[1,384], index: 3, kind: input, shape index: {}]   ;;  %s996_s4 = inlined_call_operand.hbm [shape: f32[1,384], index: 4, kind: output, shape index: {}]  }
   0x1   :  { %1002 = sst [smem:[#allocation18_spill]] %s993_s1 }
   0x2   :  { %9 = vsyncpa [#allocation3], 0 }
   0x3   :  { %11 = vsyncpa [#allocation3 + $0x1], 0 }
   0x4   :  { %12 = vsyncpa [#allocation6], 0 }
   0x5   :  { %14 = vsyncpa [#allocation6 + $0x1], 0 }
   0x6   :  { %15 = vsyncpa [#allocation9], 0 }
   0x7   :  { %17 = vsyncpa [#allocation9 + $0x1], 0 }
   0x8   :  { %18 = vsyncpa [#allocation4], 0 }
   0x9   :  { %20 = vsyncpa [#allocation4 + $0x1], 0  ;;  %s787_s15 = smov 0   ;;  %s789_s16 = smov 0  }
   0xa   :  { %s791_s17 = smov 0   ;;  %s793_s18 = smov 0  }
   0xb LB: > { %1003 = sst [smem:[#allocation15_spill]] %s753_s17  ;;  %s808_s19 = sadd.s32 4294967295, %s757_s18   ;;  %s757_s18 = sphi %s793_s18, %s1014_s18   ;;  %s753_s17 = sphi %s791_s17, %s1016_s17   ;;  %s749_s16 = sphi %s789_s16, %s1018_s16   ;;  %s745_s15 = sphi %s787_s15, %s1017_s15  }
   0xc   : > { %s487_s20 = sadd.s32 4294967294, %s757_s18   ;;  %s812_s21 = sadd.s32 1, %s757_s18  }
   0xd   : > { %1004 = sst [smem:[#allocation16_spill]] %s812_s21  ;;  %s33_s22 = sadd.s32 1, %s753_s17 }
   0xe   : > { %s30_s23 = ssub.s32 %s757_s18, %s812_s21  ;;  %p40_p0 = scmp.ne.s32.totalorder %s753_s17, %s749_s16 }
   0xf   : > { %p31_p1 = scmp.eq.s32.totalorder %s30_s23, 0  ;;  %p41_p2 = scmp.eq.s32.totalorder %s757_s18, 0 }
  0x10   : > { %p46_p3 = scmp.ne.s32.totalorder %s749_s16, %s745_s15  ;;  %p47_p4 = scmp.eq.s32.totalorder %s808_s19, 0 }
  0x11   : > { %s824_s24 = scalar_select %p31_p1, %s753_s17, %s33_s22  }
  0x12   : > { %p42_p5 = por %p41_p2, %p40_p0  ;;  %p826_p6 = por %p47_p4, %p46_p3 }
  0x13   : > { %1005 = sst [smem:[#allocation17_spill]] %s824_s24  ;;  %p148_p7 = scmp.eq.s32.totalorder %s808_s19, 2 }
  0x14   : > { %p154_p8 = scmp.eq.s32.totalorder %s487_s20, 2  ;;  %p526_p9 = scmp.lt.s32.totalorder %s757_s18, 3 }
  0x15   : > { %p832_p10 = por %p148_p7, %p40_p0  ;;  %s841_s28 = sand.u32 1, %s753_s17  }
  0x16   : > { %p836_p11 = por %p154_p8, %p46_p3  ;;  %s491_s29 = sshll.u32 %s757_s18, 3 }
  0x17   : > { %s997_s30 = sshll.u32 %s841_s28, 5  ;;  %p845_p12 = pnand %p526_p9, %p42_p5 }
  0x18   : > { %s195_s6 = sand.u32 1, %s757_s18   ;;  %s1010_s1 = sld [smem:[#allocation18_spill]] }
  0x19   : > { %s199_s11 = scalar_lea.vmem [#allocation5], %s997_s30  ;;  %s857_s13 = scalar_lea.sflag [#allocation6], %s195_s6 }
  0x1a   : > { %s206_s12 = sshll.u32 %s199_s11, 4  ;;  %p567_p0 = pneg %p845_p12  ;;  %s207_s12 = int_to_ptr.vmem [resolvable:$true] %s206_s12 }
  0x1e   : > { %s203_s9 = scalar_lea.hbm %s1010_s1, %s491_s29  ;;  %s570_s7 = scalar_lea.hbm %s1010_s1, 96 }
  0x1f   : > { %s204_s10 = sshll.u32 %s203_s9, 4  ;;  %s205_s10 = int_to_ptr.hbm [resolvable:$true] %s204_s10 }
  0x20   : > { %s563_s14 = sshra.s32 %s205_s10, 4  ;;  %s564_s14 = int_to_ptr.hbm [resolvable:$true] %s563_s14 }
  0x21   : > { %s565_s20 = scalar_lea.hbm %s564_s14, 32  ;;  %p571_p3 = scmp.lt.s32.totalorder %s564_s14, %s1010_s1 }
  0x22   : > { %p566_p13 = scmp.ne.s32.totalorder %s564_s14, %s565_s20  ;;  %p572_p4 = scmp.lt.s32.totalorder %s570_s7, %s565_s20 }
  0x24   : > { %p568_p1 = pnand %p567_p0, %p566_p13  ;;  %p573_p5 = por %p572_p4, %p571_p3 }
  0x26   : > { %p569_p2 = pneg %p568_p1 }
  0x28   : > { %p574_p7 = pnand %p573_p5, %p569_p2 }
  0x2a   : > { %577 = shalt.err (!%p574_p7)
}
  0x2b   : > { %s999_s6 = smov 384   ;;  %s760_s11 = smov 128  }
  0x2c   : > { %s761_s30 = smov 8   ;;  %p494_p8 = scmp.ge.s32.totalorder %s757_s18, 1 }
  0x2d   : > { %515 = dma.hbm_to_vmem [thread:$0]  (!%p845_p12), %s205_s10, 512, %s207_s12, %s857_s13, %s999_s6, %s760_s11, %s761_s30  }
  0x2e   : > { %p248_p9 = scmp.lt.s32.totalorder %s757_s18, 4  ;;  %s182_s23 = scalar_lea.hbm %s992_s0, %s491_s29 }
  0x2f   : > { %s183_s7 = sshll.u32 %s182_s23, 4  ;;  %s1012_s8 = sshll.u32 %s841_s28, 5  ;;  %s184_s7 = int_to_ptr.hbm [resolvable:$true] %s183_s7 }
  0x30   : > { %p877_p13 = pnand %p494_p8, %p248_p9  ;;  %s178_s9 = scalar_lea.vmem [#allocation2], %s1012_s8 }
  0x31   : > { %s185_s1 = sshll.u32 %s178_s9, 4  ;;  %s175_s24 = scalar_lea.sflag [#allocation3], %s841_s28  ;;  %s186_s1 = int_to_ptr.vmem [resolvable:$true] %s185_s1 }
  0x32   : > { %s593_s17 = sshra.s32 %s184_s7, 4  ;;  %s600_s20 = scalar_lea.hbm %s992_s0, 96  ;;  %s594_s17 = int_to_ptr.hbm [resolvable:$true] %s593_s17 }
  0x33   : > { %s595_s10 = scalar_lea.hbm %s594_s17, 32  ;;  %p601_p4 = scmp.lt.s32.totalorder %s594_s17, %s992_s0 }
  0x34   : > { %p596_p1 = scmp.ne.s32.totalorder %s594_s17, %s595_s10  ;;  %p602_p5 = scmp.lt.s32.totalorder %s600_s20, %s595_s10 }
  0x36   : > { %p598_p2 = pnand %p596_p1, %p567_p0  ;;  %p603_p7 = por %p602_p5, %p601_p4 }
  0x38   : > { %p599_p3 = pneg %p598_p2 }
  0x3a   : > { %p604_p8 = pnand %p603_p7, %p599_p3 }
  0x3c   : > { %607 = shalt.err (!%p604_p8)
}
  0x3d   : > { %s1013_s23 = smov 384   ;;  %s222_s6 = scalar_lea.hbm %s994_s2, %s757_s18 }
  0x3e   : > { %512 = dma.hbm_to_vmem [thread:$0]  (!%p845_p12), %s184_s7, 512, %s186_s1, %s175_s24, %s1013_s23, %s760_s11, %s761_s30  }
  0x3f   : > { %s224_s12 = sshll.u32 %s222_s6, 4  ;;  %s219_s21 = scalar_lea.vmem [#allocation7], %s841_s28  ;;  %s225_s12 = int_to_ptr.hbm [resolvable:$true] %s224_s12 }
  0x40   : > { %s226_s29 = sshll.u32 %s219_s21, 4  ;;  %s623_s17 = sshra.s32 %s225_s12, 4  ;;  %s227_s29 = int_to_ptr.vmem [resolvable:$true] %s226_s29  ;;  %s624_s17 = int_to_ptr.hbm [resolvable:$true] %s623_s17 }
  0x41   : > { %s625_s10 = scalar_lea.hbm %s624_s17, 1  ;;  %s630_s1 = scalar_lea.hbm %s994_s2, 3 }
  0x42   : > { %p626_p9 = scmp.ne.s32.totalorder %s624_s17, %s625_s10  ;;  %p631_p3 = scmp.lt.s32.totalorder %s624_s17, %s994_s2 }
  0x43   : > { %p632_p4 = scmp.lt.s32.totalorder %s630_s1, %s625_s10 }
  0x44   : > { %p628_p1 = pnand %p626_p9, %p567_p0 }
  0x45   : > { %p633_p5 = por %p632_p4, %p631_p3 }
  0x46   : > { %p629_p2 = pneg %p628_p1 }
  0x48   : > { %p634_p7 = pnand %p633_p5, %p629_p2 }
  0x4a   : > { %637 = shalt.err (!%p634_p7)
}
  0x4b   : > { %518 = dma.hbm_to_vmem [thread:$0]  (!%p845_p12), %s225_s12, 16, %s227_s29, %s857_s13  }
  0x4c   : > { %s239_s7 = scalar_lea.hbm %s995_s3, %s757_s18  ;;  %s236_s23 = scalar_lea.vmem [#allocation8], %s841_s28 }
  0x4d   : > { %s243_s8 = sshll.u32 %s236_s23, 4  ;;  %s241_s9 = sshll.u32 %s239_s7, 4  ;;  %s244_s8 = int_to_ptr.vmem [resolvable:$true] %s243_s8  ;;  %s242_s9 = int_to_ptr.hbm [resolvable:$true] %s241_s9 }
  0x4e   : > { %s234_s6 = scalar_lea.sflag [#allocation9], %s841_s28  ;;  %s653_s17 = sshra.s32 %s242_s9, 4  ;;  %s654_s17 = int_to_ptr.hbm [resolvable:$true] %s653_s17 }
  0x4f   : > { %s655_s10 = scalar_lea.hbm %s654_s17, 1  ;;  %s660_s12 = scalar_lea.hbm %s995_s3, 3 }
  0x50   : > { %p656_p8 = scmp.ne.s32.totalorder %s654_s17, %s655_s10  ;;  %p661_p2 = scmp.lt.s32.totalorder %s654_s17, %s995_s3 }
  0x51   : > { %p662_p3 = scmp.lt.s32.totalorder %s660_s12, %s655_s10 }
  0x52   : > { %p658_p9 = pnand %p656_p8, %p567_p0 }
  0x53   : > { %p663_p4 = por %p662_p3, %p661_p2 }
  0x54   : > { %p659_p1 = pneg %p658_p9 }
  0x56   : > { %p664_p5 = pnand %p663_p4, %p659_p1 }
  0x58   : > { %667 = shalt.err (!%p664_p5)
}
  0x59   : > { %521 = dma.hbm_to_vmem [thread:$0]  (!%p845_p12), %s242_s9, 16, %s244_s8, %s234_s6  }
  0x5a   : > { %252 = sbr.rel (%p877_p13) target bundleno = 132 (0x84), region = 36  ;;  %s939_s28 = sand.u32 (!%p877_p13), 1, %s749_s16  }
  0x5b   : > { %s495_s1 = sshll.u32 (!%p877_p13), %s939_s28, 5  ;;  %s255_s24 = scalar_lea.sflag (!%p877_p13), [#allocation3], %s939_s28 }
  0x5c   : > { %s258_s30 = scalar_lea.vmem (!%p877_p13), [#allocation2], %s495_s1 }
  0x5f   : > { %728 = dma.done.wait (%p826_p6), %s255_s24, 512  }
  0x60   : > { %730 = vsyncadd (%p826_p6), %s255_s24, 4294966784  ;;  %s264_s5 = sand.u32 1, %s808_s19   ;;  %s268_s14 = scalar_lea.vmem [#allocation5], %s495_s1 }
  0x61   : > { %s265_s21 = scalar_lea.sflag [#allocation6], %s264_s5 }
  0x62   : > { %732 = dma.done.wait (%p826_p6), %s265_s21, 528  }
  0x63   : > { %734 = vsyncadd (%p826_p6), %s265_s21, 4294966768  ;;  %s277_s11 = scalar_lea.vmem [#allocation7], %s939_s28  ;;  %s284_s7 = scalar_lea.sflag [#allocation9], %s939_s28 }
  0x64   : > { %s286_s23 = scalar_lea.vmem [#allocation8], %s939_s28 }
  0x65   : > { %736 = dma.done.wait (%p826_p6), %s284_s7, 16  }
  0x66   : > { %738 = vsyncadd (%p826_p6), %s284_s7, 4294967280  ;;  %v324_v0 = vld [vmem:[%s258_s30] sm:$0xff]  ;;  %v325_v1 = vld [vmem:[%s258_s30 + $0x8] sm:$0xff]  ;;  %s359_s9 = scalar_lea.hbm %s996_s4, %s808_s19  ;;  %s323_s6 = scalar_lea.vmem [#allocation10], %s939_s28 }
  0x67   : > { %v326_v2 = vld [vmem:[%s258_s30 + $0x10] sm:$0xff]  ;;  %v327_v3 = vld [vmem:[%s258_s30 + $0x18] sm:$0xff]  ;;  %v328_v4 = vld [vmem:[%s268_s14] sm:$0xff]  ;;  %s361_s17 = sshll.u32 %s323_s6, 4  ;;  %s363_s10 = sshll.u32 %s359_s9, 4  ;;  %s362_s17 = int_to_ptr.vmem [resolvable:$true] %s361_s17  ;;  %s364_s10 = int_to_ptr.hbm [resolvable:$true] %s363_s10 }
  0x68   : > { %v329_v5 = vld [vmem:[%s268_s14 + $0x8] sm:$0xff]  ;;  %v330_v6 = vld [vmem:[%s268_s14 + $0x10] sm:$0xff]  ;;  %v331_v7 = vld [vmem:[%s268_s14 + $0x18] sm:$0xff]  ;;  %v332_v8 = vmul.f32 %v328_v4, %v324_v0  ;;  %s351_s20 = scalar_lea.sflag [#allocation4], %s939_s28  ;;  %s697_s13 = sshra.s32 %s364_s10, 4  ;;  %s698_s13 = int_to_ptr.hbm [resolvable:$true] %s697_s13 }
  0x69   : > { %v333_v9 = vmul.f32 %v329_v5, %v325_v1  ;;  %v334_v10 = vmul.f32 %v330_v6, %v326_v2  ;;  %v335_v11 = vmul.f32 %v331_v7, %v327_v3  ;;  %v345_v20 = vld [vmem:[%s277_s11] sm:$0x1]  ;;  %s699_s12 = scalar_lea.hbm %s698_s13, 1  ;;  %s703_s22 = scalar_lea.hbm %s996_s4, 3 }
  0x6a   : > { %v347_v22 = vld [vmem:[%s286_s23] sm:$0x1]  ;;  %p700_p6 = scmp.ne.s32.totalorder %s698_s13, %s699_s12  ;;  %p704_p13 = scmp.lt.s32.totalorder %s698_s13, %s996_s4 }
  0x6b   : > { %v336_v12 = vadd.f32 %v333_v9, %v332_v8  ;;  %p705_p7 = scmp.lt.s32.totalorder %s703_s22, %s699_s12 }
  0x6c   : > { %p701_p12 = pnand %p700_p6, %p832_p10 }
  0x6d   : > { %v337_v13 = vadd.f32 %v336_v12, %v334_v10  ;;  %p706_p8 = por %p705_p7, %p704_p13 }
  0x6e   : > { %p702_p0 = pneg %p701_p12 }
  0x6f   : > { %v338_v14 = vadd.f32 %v337_v13, %v335_v11 }
  0x70   : > { %p707_p9 = pnand %p706_p8, %p702_p0 }
  0x71   : > { %v339_v15 = vrot.slane %v338_v14, 4 }
  0x73   : > { %v340_v16 = vadd.f32 %v339_v15, %v338_v14 }
  0x75   : > { %v341_v17 = vrot.slane %v340_v16, 2 }
  0x77   : > { %v342_v18 = vadd.f32 %v341_v17, %v340_v16 }
  0x79   : > { %v343_v19 = vrot.slane %v342_v18, 1 }
  0x7b   : > { %v344_v21 = vadd.f32 %v343_v19, %v342_v18 }
  0x7d   : > { %v346_v23 = vadd.f32 %v345_v20, %v344_v21 }
  0x7f   : > { %v348_v24 = vadd.f32 %v347_v22, %v346_v23 }
  0x81   : > { %349 = vst [vmem:[%s323_s6] sm:$0x1] %v348_v24 }
  0x82   : > { %710 = shalt.err (!%p707_p9)
}
  0x83   : > { %507 = dma.vmem_to_hbm [thread:$0]  (%p832_p10), %s362_s17, 16, %s364_s10, %s351_s20  }
  0x84 PF: > { %p527_p1 = scmp.ge.s32.totalorder %s757_s18, 2  ;;  %s375_s28 = sand.u32 1, %s745_s15  }
  0x85   : > { %s376_s30 = scalar_lea.sflag [#allocation4], %s375_s28 }
  0x86   : > { %p523_p2 = pnand %p527_p1, %p836_p11 }
  0x88   : > { %p524_p3 = pneg %p523_p2 }
  0x8a   : > { %740 = dma.done.wait (%p524_p3), %s376_s30, 16  }
  0x8b   : > { %742 = vsyncadd (%p524_p3), %s376_s30, 4294967280  ;;  %s1014_s18 = sld [smem:[#allocation16_spill]]  ;;  %s1017_s15 = smov %s749_s16 }
  0x8c   : > { %s1015_s5 = sld [smem:[#allocation15_spill]] }
  0x8d   : > { %s1016_s17 = sld [smem:[#allocation17_spill]] }
  0x91   : > { %p23_p4 = scmp.ge.s32.totalorder %s1014_s18, 5  }
  0x92   : > { %s1018_s16 = smov %s1015_s5 }
  0x93   :  { %25 = sbr.rel (!%p23_p4) target bundleno = 11 (0xb), region = 118 }
  0x98   :  { %381 = vsyncpa [#allocation3], 1 }
  0x99   :  { %383 = vsyncpa [#allocation3 + $0x1], 1 }
  0x9a   :  { %384 = vsyncpa [#allocation6], 1 }
  0x9b   :  { %386 = vsyncpa [#allocation6 + $0x1], 1 }
  0x9c   :  { %387 = vsyncpa [#allocation9], 1 }
  0x9d   :  { %389 = vsyncpa [#allocation9 + $0x1], 1 }
  0x9e   :  { %390 = vsyncpa [#allocation4], 1 }
  0x9f   :  { %392 = vsyncpa [#allocation4 + $0x1], 1 }

</bundles_post_ra>
